<compile_context>
chip_gen: v5e
topology: v5e:2x2
jax: 0.10.0
libtpu: 0.0.40
codegen_flags: <defaults>
</compile_context>

<pallas_src>
import functools

import jax
import jax.numpy as jnp
from jax import lax
from jax.experimental import pallas as pl
from jax.experimental.pallas import tpu as pltpu


def _brm_kernel(x1_ref, xe_ref, masks_ref, pool_ref, expand_ref,
                watt_ref, w1_ref, w2_ref,
                s1_ref, b1_ref, s2_ref, b2_ref,
                o_ref, patch_ref, *, W, HW, NB, C, CP, C2P):
    # x1_ref, xe_ref: (CP, L)   channel-major, L = NB*HW lanes (NB samples)
    # masks_ref:      (9, L)    precomputed border masks, tap-major
    # pool_ref:       (L, NB)   per-sample average-pool matrix (used if NB>1)
    # expand_ref:     (NB, L)   per-sample indicator matrix     (used if NB>1)
    # watt_ref:       (C2P, C2P)  padded 1x1 attention weight
    # w1_ref:         (CP, 9*C2P) conv_1 im2col weight, cols (kh, kw, ci)
    # w2_ref:         (CP, 9*CP)  conv_2 im2col weight
    # s*/b*:          (CP, 1)   folded BN scale / shift columns
    # o_ref:          (C, L)    output block
    # patch_ref:      (9*C2P, L) VMEM im2col scratch
    L = NB * HW
    x1 = x1_ref[...].astype(jnp.float32)           # (CP, L)
    xe = xe_ref[...].astype(jnp.float32)           # (CP, L)
    x = jnp.concatenate([x1, xe], axis=0)          # (2CP, L), 8-aligned pieces

    # ---- per-sample global average pool + 1x1 attention + sigmoid gate ----
    if NB == 1:
        gap = jnp.mean(x, axis=-1, keepdims=True)                    # (2CP, 1)
        gap_b = jnp.broadcast_to(gap, (C2P, 128))                    # 1 lane tile
        att = jax.nn.sigmoid(
            jnp.dot(watt_ref[...], gap_b, preferred_element_type=jnp.float32))
        att_full = jnp.broadcast_to(att[:, 0:1], (C2P, L))
    else:
        gap = jnp.dot(x, pool_ref[...],
                      preferred_element_type=jnp.float32)            # (2CP, NB)
        att = jax.nn.sigmoid(
            jnp.dot(watt_ref[...], gap, preferred_element_type=jnp.float32))
        att_full = jnp.dot(att, expand_ref[...],
                           preferred_element_type=jnp.float32)       # (2CP, L)
    gated = x * att_full                                             # (2CP, L)

    # ---- 3x3 conv: roll + mask the 9 taps into the VMEM im2col scratch,
    #      then a single MXU dot.  Border masks already zero every lane a roll
    #      wraps across an image / sample boundary.
    taps = [dr * W + dc for dr in (-1, 0, 1) for dc in (-1, 0, 1)]

    def conv3x3(v, w_ref, cin):
        for k, d in enumerate(taps):
            if d == 0:
                piece = v                                            # center tap
            else:
                piece = (pltpu.roll(v, (-d) % L, axis=1) *
                         masks_ref[pl.ds(k, 1), :])
            patch_ref[pl.ds(k * cin, cin), :] = piece
        return jnp.dot(w_ref[...], patch_ref[pl.ds(0, 9 * cin), :],
                       preferred_element_type=jnp.float32)           # (CP, L)

    # conv_1 (2C -> C) + residual + folded BN1 + ReLU
    h = conv3x3(gated, w1_ref, C2P) + x1
    h = jnp.maximum(h * s1_ref[...] + b1_ref[...], 0.0)
    # conv_2 (C -> C) + folded BN2 + ReLU
    out = conv3x3(h, w2_ref, CP)
    out = jnp.maximum(out * s2_ref[...] + b2_ref[...], 0.0)

    o_ref[...] = out[:C].astype(o_ref.dtype)                         # (C, L)


def brm_forward(x1_nchw, xedge_nchw, w_atten, w1, w2,
                gamma1, beta1, rmean1, rvar1,
                gamma2, beta2, rmean2, rvar2, eps=1e-5):
    """x1_nchw, xedge_nchw: (N, C, H, W). Weights in PyTorch OIHW layout.
    Returns (N, C, H, W) in the caller's dtype."""
    N, C, H, W = x1_nchw.shape
    HW = H * W
    C2 = 2 * C
    CP = -(-C // 8) * 8                 # channels padded to 8-sublane tiles
    C2P = 2 * CP
    f32 = jnp.float32

    # Grid: 2 steps when legal (keeps both v7x TensorCores busy); otherwise 1
    # step with every sample flattened into the lane axis.
    if N % 2 == 0 and ((N // 2) * HW) % 128 == 0:
        G = 2
    else:
        G = 1
    NB = N // G
    L = NB * HW

    def to_channel_major(a):
        a = jnp.transpose(a.reshape(N, C, HW), (1, 0, 2)).reshape(C, N * HW)
        return jnp.pad(a, ((0, CP - C), (0, 0)))
    x1_cm = to_channel_major(x1_nchw)                   # (CP, N*HW)
    xe_cm = to_channel_major(xedge_nchw)

    # 9 border masks keyed on lane % HW (also zero cross-sample roll wrap).
    pos = jnp.arange(L, dtype=jnp.int32) % HW
    row, col = pos // W, pos % W
    masks = jnp.stack(
        [((row + dr >= 0) & (row + dr < H) & (col + dc >= 0) & (col + dc < W))
         for dr in (-1, 0, 1) for dc in (-1, 0, 1)],
        axis=0).astype(f32)                                          # (9, L)

    # Per-sample average-pool / indicator matrices (only read when NB > 1).
    seg = jnp.arange(L, dtype=jnp.int32) // HW
    pool = (seg[:, None] == jnp.arange(NB)[None, :]).astype(f32) / HW   # (L, NB)
    expand = (seg[None, :] == jnp.arange(NB)[:, None]).astype(f32)      # (NB, L)

    # 1x1 attention weight remapped to the channel-padded concat layout:
    # concat channels are [x1 0..CP-1 | xe 0..CP-1], real entries at 0..C-1
    # and CP..CP+C-1.
    watt = w_atten.reshape(C2, C2).astype(f32)
    watt_p = jnp.zeros((C2P, C2P), f32)
    watt_p = watt_p.at[:C, :C].set(watt[:C, :C])
    watt_p = watt_p.at[:C, CP:CP + C].set(watt[:C, C:])
    watt_p = watt_p.at[CP:CP + C, :C].set(watt[C:, :C])
    watt_p = watt_p.at[CP:CP + C, CP:CP + C].set(watt[C:, C:])

    # 3x3 conv weights OIHW -> channel-padded im2col (Cout_p, 9*Cin_p),
    # column order (kh, kw, cin) to match the tap-major patch rows.
    w1p = jnp.zeros((CP, C2P, 3, 3), f32)
    w1p = w1p.at[:C, :C].set(w1[:, :C].astype(f32))
    w1p = w1p.at[:C, CP:CP + C].set(w1[:, C:].astype(f32))
    w1_mat = jnp.transpose(w1p, (0, 2, 3, 1)).reshape(CP, 9 * C2P)
    w2p = jnp.zeros((CP, CP, 3, 3), f32).at[:C, :C].set(w2.astype(f32))
    w2_mat = jnp.transpose(w2p, (0, 2, 3, 1)).reshape(CP, 9 * CP)

    # Fold BatchNorm (eval mode) into per-channel scale/shift columns (CP, 1).
    def fold_bn(gamma, beta, rmean, rvar):
        inv = 1.0 / jnp.sqrt(rvar.astype(f32) + eps)
        scale = jnp.ones((CP,), f32).at[:C].set(gamma.astype(f32) * inv)
        shift = jnp.zeros((CP,), f32).at[:C].set(
            beta.astype(f32) - rmean.astype(f32) * gamma.astype(f32) * inv)
        return scale.reshape(CP, 1), shift.reshape(CP, 1)
    scale1, shift1 = fold_bn(gamma1, beta1, rmean1, rvar1)
    scale2, shift2 = fold_bn(gamma2, beta2, rmean2, rvar2)

    kernel = functools.partial(_brm_kernel, W=W, HW=HW, NB=NB,
                               C=C, CP=CP, C2P=C2P)
    out_cm = pl.pallas_call(
        kernel,
        out_shape=jax.ShapeDtypeStruct((C, N * HW), x1_nchw.dtype),
        grid=(G,),
        in_specs=[
            pl.BlockSpec((CP, L), lambda g: (0, g)),        # x_1   (channel-major)
            pl.BlockSpec((CP, L), lambda g: (0, g)),        # x_edge
            pl.BlockSpec((9, L), lambda g: (0, 0)),         # border masks
            pl.BlockSpec((L, NB), lambda g: (0, 0)),        # segment avg-pool
            pl.BlockSpec((NB, L), lambda g: (0, 0)),        # segment expand
            pl.BlockSpec((C2P, C2P), lambda g: (0, 0)),     # attention weight
            pl.BlockSpec((CP, 9 * C2P), lambda g: (0, 0)),  # conv_1 im2col weight
            pl.BlockSpec((CP, 9 * CP), lambda g: (0, 0)),   # conv_2 im2col weight
            pl.BlockSpec((CP, 1), lambda g: (0, 0)),        # bn_1 scale
            pl.BlockSpec((CP, 1), lambda g: (0, 0)),        # bn_1 shift
            pl.BlockSpec((CP, 1), lambda g: (0, 0)),        # bn_2 scale
            pl.BlockSpec((CP, 1), lambda g: (0, 0)),        # bn_2 shift
        ],
        out_specs=pl.BlockSpec((C, L), lambda g: (0, g)),
        scratch_shapes=[pltpu.VMEM((9 * C2P, L), jnp.float32)],
        compiler_params=pltpu.CompilerParams(
            dimension_semantics=("parallel",)),
    )(x1_cm, xe_cm, masks, pool, expand, watt_p, w1_mat, w2_mat,
      scale1, shift1, scale2, shift2)

    return jnp.transpose(out_cm.reshape(C, N, H, W), (1, 0, 2, 3))


def brm_reference(x1, xe, w_atten, w1, w2,
                  gamma1, beta1, rmean1, rvar1,
                  gamma2, beta2, rmean2, rvar2, eps=1e-5):
    """Pure-JAX reference matching the PyTorch BRM forward (BN in eval mode)."""
    x = jnp.concatenate([x1, xe], axis=1)                        # (N, 2C, H, W)
    atten = jnp.mean(x, axis=(2, 3), keepdims=True)              # (N, 2C, 1, 1)
    atten = lax.conv_general_dilated(
        atten, w_atten, (1, 1), "VALID",
        dimension_numbers=("NCHW", "OIHW", "NCHW"))
    atten = jax.nn.sigmoid(atten)
    out = x * atten
    out = lax.conv_general_dilated(
        out, w1, (1, 1), ((1, 1), (1, 1)),
        dimension_numbers=("NCHW", "OIHW", "NCHW")) + x1
    inv1 = 1.0 / jnp.sqrt(rvar1 + eps)
    out = (out - rmean1[None, :, None, None]) * \
        (gamma1 * inv1)[None, :, None, None] + beta1[None, :, None, None]
    out = jnp.maximum(out, 0.0)
    out = lax.conv_general_dilated(
        out, w2, (1, 1), ((1, 1), (1, 1)),
        dimension_numbers=("NCHW", "OIHW", "NCHW"))
    inv2 = 1.0 / jnp.sqrt(rvar2 + eps)
    out = (out - rmean2[None, :, None, None]) * \
        (gamma2 * inv2)[None, :, None, None] + beta2[None, :, None, None]
    return jnp.maximum(out, 0.0)


if __name__ == "__main__":
    N, C, H, W = 2, 4, 16, 16     # BRM(channel=4): concatenated input has 2C=8 channels
    C2 = 2 * C

    key = jax.random.PRNGKey(0)
    k1, k2, ka, kc1, kc2 = jax.random.split(key, 5)

    x_1 = jax.random.normal(k1, (N, C, H, W), jnp.float32)
    x_edge = jax.random.normal(k2, (N, C, H, W), jnp.float32)

    # conv_atten: Conv2d(2C, 2C, 1, bias=False), kaiming fan_in relu
    w_atten = jax.random.normal(ka, (C2, C2, 1, 1), jnp.float32) * \
        jnp.sqrt(2.0 / (C2 * 1 * 1))
    # conv_1: Conv2d(2C, C, 3, padding=1, bias=False)
    w1 = jax.random.normal(kc1, (C, C2, 3, 3), jnp.float32) * \
        jnp.sqrt(2.0 / (C2 * 3 * 3))
    # conv_2: Conv2d(C, C, 3, padding=1, bias=False)
    w2 = jax.random.normal(kc2, (C, C, 3, 3), jnp.float32) * \
        jnp.sqrt(2.0 / (C * 3 * 3))

    # BatchNorm2d(C) as freshly initialized (weight_init: ones/zeros), eval mode
    gamma1 = jnp.ones((C,), jnp.float32)
    beta1 = jnp.zeros((C,), jnp.float32)
    rmean1 = jnp.zeros((C,), jnp.float32)
    rvar1 = jnp.ones((C,), jnp.float32)
    gamma2 = jnp.ones((C,), jnp.float32)
    beta2 = jnp.zeros((C,), jnp.float32)
    rmean2 = jnp.zeros((C,), jnp.float32)
    rvar2 = jnp.ones((C,), jnp.float32)

    out = brm_forward(x_1, x_edge, w_atten, w1, w2,
                      gamma1, beta1, rmean1, rvar1,
                      gamma2, beta2, rmean2, rvar2)
    out = jax.block_until_ready(out)

    ref = brm_reference(x_1, x_edge, w_atten, w1, w2,
                        gamma1, beta1, rmean1, rvar1,
                        gamma2, beta2, rmean2, rvar2)
    ref = jax.block_until_ready(ref)

    assert out.shape == (N, C, H, W)
    err = jnp.max(jnp.abs(out - ref))
    assert jnp.allclose(out, ref, atol=1e-4, rtol=1e-4), f"max abs err {err}"

    print("KERNEL_OK")
</pallas_src>

<mosaic_0001>
module attributes {stable_mosaic.version = 11 : i64} {
  func.func @_brm_kernel(%arg0: i32, %arg1: memref<8x256xf32, #tpu.memory_space<vmem>>, %arg2: memref<8x256xf32, #tpu.memory_space<vmem>>, %arg3: memref<9x256xf32, #tpu.memory_space<vmem>>, %arg4: memref<256x1xf32, #tpu.memory_space<vmem>>, %arg5: memref<1x256xf32, #tpu.memory_space<vmem>>, %arg6: memref<16x16xf32, #tpu.memory_space<vmem>>, %arg7: memref<8x144xf32, #tpu.memory_space<vmem>>, %arg8: memref<8x72xf32, #tpu.memory_space<vmem>>, %arg9: memref<8x1xf32, #tpu.memory_space<vmem>>, %arg10: memref<8x1xf32, #tpu.memory_space<vmem>>, %arg11: memref<8x1xf32, #tpu.memory_space<vmem>>, %arg12: memref<8x1xf32, #tpu.memory_space<vmem>>, %arg13: memref<4x256xf32, #tpu.memory_space<vmem>>, %arg14: memref<144x256xf32, #tpu.memory_space<vmem>>) attributes {dimension_semantics = [#tpu.dimension_semantics<parallel>], iteration_bounds = array<i64: 2>, scalar_prefetch = 0 : i64, scratch_operands = 1 : i64, tpu.core_type = #tpu.core_type<tc>, window_params = [{transform_indices = @transform_0, window_bounds = array<i64: 8, 256>}, {transform_indices = @transform_1, window_bounds = array<i64: 8, 256>}, {pipeline_mode = #tpu.pipeline_mode<synchronous>, transform_indices = @transform_2, window_bounds = array<i64: 9, 256>}, {pipeline_mode = #tpu.pipeline_mode<synchronous>, transform_indices = @transform_3, window_bounds = array<i64: 256, 1>}, {pipeline_mode = #tpu.pipeline_mode<synchronous>, transform_indices = @transform_4, window_bounds = array<i64: 1, 256>}, {pipeline_mode = #tpu.pipeline_mode<synchronous>, transform_indices = @transform_5, window_bounds = array<i64: 16, 16>}, {pipeline_mode = #tpu.pipeline_mode<synchronous>, transform_indices = @transform_6, window_bounds = array<i64: 8, 144>}, {pipeline_mode = #tpu.pipeline_mode<synchronous>, transform_indices = @transform_7, window_bounds = array<i64: 8, 72>}, {pipeline_mode = #tpu.pipeline_mode<synchronous>, transform_indices = @transform_8, window_bounds = array<i64: 8, 1>}, {pipeline_mode = #tpu.pipeline_mode<synchronous>, transform_indices = @transform_9, window_bounds = array<i64: 8, 1>}, {pipeline_mode = #tpu.pipeline_mode<synchronous>, transform_indices = @transform_10, window_bounds = array<i64: 8, 1>}, {pipeline_mode = #tpu.pipeline_mode<synchronous>, transform_indices = @transform_11, window_bounds = array<i64: 8, 1>}, {transform_indices = @transform_12, window_bounds = array<i64: 4, 256>}]} {
    %c0 = arith.constant 0 : index
    %c0_0 = arith.constant 0 : index
    %0 = vector.load %arg1[%c0, %c0_0] : memref<8x256xf32, #tpu.memory_space<vmem>>, vector<8x256xf32>
    %c0_1 = arith.constant 0 : index
    %c0_2 = arith.constant 0 : index
    %1 = vector.load %arg2[%c0_1, %c0_2] : memref<8x256xf32, #tpu.memory_space<vmem>>, vector<8x256xf32>
    %2 = tpu.concatenate %0, %1 in 0 : vector<8x256xf32>, vector<8x256xf32> -> vector<16x256xf32>
    %cst = arith.constant dense<0.000000e+00> : vector<16xf32>
    %3 = vector.multi_reduction <add>, %2, %cst [1] : vector<16x256xf32> to vector<16xf32>
    %4 = vector.shape_cast %3 : vector<16xf32> to vector<16x1xf32>
    %cst_3 = arith.constant 2.560000e+02 : f32
    %5 = vector.broadcast %cst_3 : f32 to vector<16x1xf32>
    %6 = arith.divf %4, %5 : vector<16x1xf32>
    %7 = vector.shape_cast %6 : vector<16x1xf32> to vector<16x1xf32>
    %8 = vector.broadcast %7 : vector<16x1xf32> to vector<16x128xf32>
    %c0_4 = arith.constant 0 : index
    %c0_5 = arith.constant 0 : index
    %9 = vector.load %arg6[%c0_4, %c0_5] : memref<16x16xf32, #tpu.memory_space<vmem>>, vector<16x16xf32>
    %cst_6 = arith.constant dense<0.000000e+00> : vector<16x128xf32>
    %10 = tpu.matmul %9, %8, %cst_6 {dimension_numbers = #tpu.dot_dimension_numbers<[1], [0], [0], [1], [0, 0, 1, 1], [], []>} : vector<16x16xf32>, vector<16x128xf32>, vector<16x128xf32> -> vector<16x128xf32>
    %11 = arith.negf %10 : vector<16x128xf32>
    %12 = math.exp %11 : vector<16x128xf32>
    %cst_7 = arith.constant 1.000000e+00 : f32
    %13 = vector.broadcast %cst_7 : f32 to vector<16x128xf32>
    %14 = arith.addf %13, %12 : vector<16x128xf32>
    %15 = arith.divf %13, %14 : vector<16x128xf32>
    %16 = vector.extract_strided_slice %15 {offsets = [0, 0], sizes = [16, 1], strides = [1, 1]} : vector<16x128xf32> to vector<16x1xf32>
    %17 = vector.shape_cast %16 : vector<16x1xf32> to vector<16x1xf32>
    %18 = vector.broadcast %17 : vector<16x1xf32> to vector<16x256xf32>
    %19 = arith.mulf %2, %18 : vector<16x256xf32>
    %c17_i32 = arith.constant 17 : i32
    %20 = tpu.dynamic_rotate %19 by %c17_i32 dim 1 : vector<16x256xf32>, i32 -> vector<16x256xf32>
    %c0_8 = arith.constant 0 : index
    %c0_9 = arith.constant 0 : index
    %21 = vector.load %arg3[%c0_8, %c0_9] : memref<9x256xf32, #tpu.memory_space<vmem>>, vector<1x256xf32>
    %22 = vector.broadcast %21 : vector<1x256xf32> to vector<16x256xf32>
    %23 = arith.mulf %20, %22 : vector<16x256xf32>
    %c0_10 = arith.constant 0 : index
    %c0_11 = arith.constant 0 : index
    %24 = vector.load %arg14[%c0_10, %c0_11] : memref<144x256xf32, #tpu.memory_space<vmem>>, vector<16x256xf32>
    tpu.vector_store %arg14[%c0_10, %c0_11], %23 {strides = array<i32>} : memref<144x256xf32, #tpu.memory_space<vmem>>, vector<16x256xf32>,
    %c16_i32 = arith.constant 16 : i32
    %25 = tpu.dynamic_rotate %19 by %c16_i32 dim 1 : vector<16x256xf32>, i32 -> vector<16x256xf32>
    %c1 = arith.constant 1 : index
    %c0_12 = arith.constant 0 : index
    %26 = vector.load %arg3[%c1, %c0_12] : memref<9x256xf32, #tpu.memory_space<vmem>>, vector<1x256xf32>
    %27 = vector.broadcast %26 : vector<1x256xf32> to vector<16x256xf32>
    %28 = arith.mulf %25, %27 : vector<16x256xf32>
    %c16 = arith.constant 16 : index
    %c0_13 = arith.constant 0 : index
    %29 = vector.load %arg14[%c16, %c0_13] : memref<144x256xf32, #tpu.memory_space<vmem>>, vector<16x256xf32>
    tpu.vector_store %arg14[%c16, %c0_13], %28 {strides = array<i32>} : memref<144x256xf32, #tpu.memory_space<vmem>>, vector<16x256xf32>,
    %c15_i32 = arith.constant 15 : i32
    %30 = tpu.dynamic_rotate %19 by %c15_i32 dim 1 : vector<16x256xf32>, i32 -> vector<16x256xf32>
    %c2 = arith.constant 2 : index
    %c0_14 = arith.constant 0 : index
    %31 = vector.load %arg3[%c2, %c0_14] : memref<9x256xf32, #tpu.memory_space<vmem>>, vector<1x256xf32>
    %32 = vector.broadcast %31 : vector<1x256xf32> to vector<16x256xf32>
    %33 = arith.mulf %30, %32 : vector<16x256xf32>
    %c32 = arith.constant 32 : index
    %c0_15 = arith.constant 0 : index
    %34 = vector.load %arg14[%c32, %c0_15] : memref<144x256xf32, #tpu.memory_space<vmem>>, vector<16x256xf32>
    tpu.vector_store %arg14[%c32, %c0_15], %33 {strides = array<i32>} : memref<144x256xf32, #tpu.memory_space<vmem>>, vector<16x256xf32>,
    %c1_i32 = arith.constant 1 : i32
    %35 = tpu.dynamic_rotate %19 by %c1_i32 dim 1 : vector<16x256xf32>, i32 -> vector<16x256xf32>
    %c3 = arith.constant 3 : index
    %c0_16 = arith.constant 0 : index
    %36 = vector.load %arg3[%c3, %c0_16] : memref<9x256xf32, #tpu.memory_space<vmem>>, vector<1x256xf32>
    %37 = vector.broadcast %36 : vector<1x256xf32> to vector<16x256xf32>
    %38 = arith.mulf %35, %37 : vector<16x256xf32>
    %c48 = arith.constant 48 : index
    %c0_17 = arith.constant 0 : index
    %39 = vector.load %arg14[%c48, %c0_17] : memref<144x256xf32, #tpu.memory_space<vmem>>, vector<16x256xf32>
    tpu.vector_store %arg14[%c48, %c0_17], %38 {strides = array<i32>} : memref<144x256xf32, #tpu.memory_space<vmem>>, vector<16x256xf32>,
    %c64 = arith.constant 64 : index
    %c0_18 = arith.constant 0 : index
    %40 = vector.load %arg14[%c64, %c0_18] : memref<144x256xf32, #tpu.memory_space<vmem>>, vector<16x256xf32>
    tpu.vector_store %arg14[%c64, %c0_18], %19 {strides = array<i32>} : memref<144x256xf32, #tpu.memory_space<vmem>>, vector<16x256xf32>,
    %c255_i32 = arith.constant 255 : i32
    %41 = tpu.dynamic_rotate %19 by %c255_i32 dim 1 : vector<16x256xf32>, i32 -> vector<16x256xf32>
    %c5 = arith.constant 5 : index
    %c0_19 = arith.constant 0 : index
    %42 = vector.load %arg3[%c5, %c0_19] : memref<9x256xf32, #tpu.memory_space<vmem>>, vector<1x256xf32>
    %43 = vector.broadcast %42 : vector<1x256xf32> to vector<16x256xf32>
    %44 = arith.mulf %41, %43 : vector<16x256xf32>
    %c80 = arith.constant 80 : index
    %c0_20 = arith.constant 0 : index
    %45 = vector.load %arg14[%c80, %c0_20] : memref<144x256xf32, #tpu.memory_space<vmem>>, vector<16x256xf32>
    tpu.vector_store %arg14[%c80, %c0_20], %44 {strides = array<i32>} : memref<144x256xf32, #tpu.memory_space<vmem>>, vector<16x256xf32>,
    %c241_i32 = arith.constant 241 : i32
    %46 = tpu.dynamic_rotate %19 by %c241_i32 dim 1 : vector<16x256xf32>, i32 -> vector<16x256xf32>
    %c6 = arith.constant 6 : index
    %c0_21 = arith.constant 0 : index
    %47 = vector.load %arg3[%c6, %c0_21] : memref<9x256xf32, #tpu.memory_space<vmem>>, vector<1x256xf32>
    %48 = vector.broadcast %47 : vector<1x256xf32> to vector<16x256xf32>
    %49 = arith.mulf %46, %48 : vector<16x256xf32>
    %c96 = arith.constant 96 : index
    %c0_22 = arith.constant 0 : index
    %50 = vector.load %arg14[%c96, %c0_22] : memref<144x256xf32, #tpu.memory_space<vmem>>, vector<16x256xf32>
    tpu.vector_store %arg14[%c96, %c0_22], %49 {strides = array<i32>} : memref<144x256xf32, #tpu.memory_space<vmem>>, vector<16x256xf32>,
    %c240_i32 = arith.constant 240 : i32
    %51 = tpu.dynamic_rotate %19 by %c240_i32 dim 1 : vector<16x256xf32>, i32 -> vector<16x256xf32>
    %c7 = arith.constant 7 : index
    %c0_23 = arith.constant 0 : index
    %52 = vector.load %arg3[%c7, %c0_23] : memref<9x256xf32, #tpu.memory_space<vmem>>, vector<1x256xf32>
    %53 = vector.broadcast %52 : vector<1x256xf32> to vector<16x256xf32>
    %54 = arith.mulf %51, %53 : vector<16x256xf32>
    %c112 = arith.constant 112 : index
    %c0_24 = arith.constant 0 : index
    %55 = vector.load %arg14[%c112, %c0_24] : memref<144x256xf32, #tpu.memory_space<vmem>>, vector<16x256xf32>
    tpu.vector_store %arg14[%c112, %c0_24], %54 {strides = array<i32>} : memref<144x256xf32, #tpu.memory_space<vmem>>, vector<16x256xf32>,
    %c239_i32 = arith.constant 239 : i32
    %56 = tpu.dynamic_rotate %19 by %c239_i32 dim 1 : vector<16x256xf32>, i32 -> vector<16x256xf32>
    %c8 = arith.constant 8 : index
    %c0_25 = arith.constant 0 : index
    %57 = vector.load %arg3[%c8, %c0_25] : memref<9x256xf32, #tpu.memory_space<vmem>>, vector<1x256xf32>
    %58 = vector.broadcast %57 : vector<1x256xf32> to vector<16x256xf32>
    %59 = arith.mulf %56, %58 : vector<16x256xf32>
    %c128 = arith.constant 128 : index
    %c0_26 = arith.constant 0 : index
    %60 = vector.load %arg14[%c128, %c0_26] : memref<144x256xf32, #tpu.memory_space<vmem>>, vector<16x256xf32>
    tpu.vector_store %arg14[%c128, %c0_26], %59 {strides = array<i32>} : memref<144x256xf32, #tpu.memory_space<vmem>>, vector<16x256xf32>,
    %c0_27 = arith.constant 0 : index
    %c0_28 = arith.constant 0 : index
    %61 = vector.load %arg7[%c0_27, %c0_28] : memref<8x144xf32, #tpu.memory_space<vmem>>, vector<8x144xf32>
    %c0_29 = arith.constant 0 : index
    %c0_30 = arith.constant 0 : index
    %62 = vector.load %arg14[%c0_29, %c0_30] : memref<144x256xf32, #tpu.memory_space<vmem>>, vector<144x256xf32>
    %cst_31 = arith.constant dense<0.000000e+00> : vector<8x256xf32>
    %63 = tpu.matmul %61, %62, %cst_31 {dimension_numbers = #tpu.dot_dimension_numbers<[1], [0], [0], [1], [0, 0, 1, 1], [], []>} : vector<8x144xf32>, vector<144x256xf32>, vector<8x256xf32> -> vector<8x256xf32>
    %64 = arith.addf %63, %0 : vector<8x256xf32>
    %c0_32 = arith.constant 0 : index
    %c0_33 = arith.constant 0 : index
    %65 = vector.load %arg9[%c0_32, %c0_33] : memref<8x1xf32, #tpu.memory_space<vmem>>, vector<8x1xf32>
    %66 = vector.broadcast %65 : vector<8x1xf32> to vector<8x256xf32>
    %67 = arith.mulf %64, %66 : vector<8x256xf32>
    %c0_34 = arith.constant 0 : index
    %c0_35 = arith.constant 0 : index
    %68 = vector.load %arg10[%c0_34, %c0_35] : memref<8x1xf32, #tpu.memory_space<vmem>>, vector<8x1xf32>
    %69 = vector.broadcast %68 : vector<8x1xf32> to vector<8x256xf32>
    %70 = arith.addf %67, %69 : vector<8x256xf32>
    %cst_36 = arith.constant 0.000000e+00 : f32
    %71 = vector.broadcast %cst_36 : f32 to vector<8x256xf32>
    %72 = arith.maximumf %70, %71 : vector<8x256xf32>
    %c17_i32_37 = arith.constant 17 : i32
    %73 = tpu.dynamic_rotate %72 by %c17_i32_37 dim 1 : vector<8x256xf32>, i32 -> vector<8x256xf32>
    %c0_38 = arith.constant 0 : index
    %c0_39 = arith.constant 0 : index
    %74 = vector.load %arg3[%c0_38, %c0_39] : memref<9x256xf32, #tpu.memory_space<vmem>>, vector<1x256xf32>
    %75 = vector.broadcast %74 : vector<1x256xf32> to vector<8x256xf32>
    %76 = arith.mulf %73, %75 : vector<8x256xf32>
    %c0_40 = arith.constant 0 : index
    %c0_41 = arith.constant 0 : index
    %77 = vector.load %arg14[%c0_40, %c0_41] : memref<144x256xf32, #tpu.memory_space<vmem>>, vector<8x256xf32>
    tpu.vector_store %arg14[%c0_40, %c0_41], %76 {strides = array<i32>} : memref<144x256xf32, #tpu.memory_space<vmem>>, vector<8x256xf32>,
    %c16_i32_42 = arith.constant 16 : i32
    %78 = tpu.dynamic_rotate %72 by %c16_i32_42 dim 1 : vector<8x256xf32>, i32 -> vector<8x256xf32>
    %c1_43 = arith.constant 1 : index
    %c0_44 = arith.constant 0 : index
    %79 = vector.load %arg3[%c1_43, %c0_44] : memref<9x256xf32, #tpu.memory_space<vmem>>, vector<1x256xf32>
    %80 = vector.broadcast %79 : vector<1x256xf32> to vector<8x256xf32>
    %81 = arith.mulf %78, %80 : vector<8x256xf32>
    %c8_45 = arith.constant 8 : index
    %c0_46 = arith.constant 0 : index
    %82 = vector.load %arg14[%c8_45, %c0_46] : memref<144x256xf32, #tpu.memory_space<vmem>>, vector<8x256xf32>
    tpu.vector_store %arg14[%c8_45, %c0_46], %81 {strides = array<i32>} : memref<144x256xf32, #tpu.memory_space<vmem>>, vector<8x256xf32>,
    %c15_i32_47 = arith.constant 15 : i32
    %83 = tpu.dynamic_rotate %72 by %c15_i32_47 dim 1 : vector<8x256xf32>, i32 -> vector<8x256xf32>
    %c2_48 = arith.constant 2 : index
    %c0_49 = arith.constant 0 : index
    %84 = vector.load %arg3[%c2_48, %c0_49] : memref<9x256xf32, #tpu.memory_space<vmem>>, vector<1x256xf32>
    %85 = vector.broadcast %84 : vector<1x256xf32> to vector<8x256xf32>
    %86 = arith.mulf %83, %85 : vector<8x256xf32>
    %c16_50 = arith.constant 16 : index
    %c0_51 = arith.constant 0 : index
    %87 = vector.load %arg14[%c16_50, %c0_51] : memref<144x256xf32, #tpu.memory_space<vmem>>, vector<8x256xf32>
    tpu.vector_store %arg14[%c16_50, %c0_51], %86 {strides = array<i32>} : memref<144x256xf32, #tpu.memory_space<vmem>>, vector<8x256xf32>,
    %c1_i32_52 = arith.constant 1 : i32
    %88 = tpu.dynamic_rotate %72 by %c1_i32_52 dim 1 : vector<8x256xf32>, i32 -> vector<8x256xf32>
    %c3_53 = arith.constant 3 : index
    %c0_54 = arith.constant 0 : index
    %89 = vector.load %arg3[%c3_53, %c0_54] : memref<9x256xf32, #tpu.memory_space<vmem>>, vector<1x256xf32>
    %90 = vector.broadcast %89 : vector<1x256xf32> to vector<8x256xf32>
    %91 = arith.mulf %88, %90 : vector<8x256xf32>
    %c24 = arith.constant 24 : index
    %c0_55 = arith.constant 0 : index
    %92 = vector.load %arg14[%c24, %c0_55] : memref<144x256xf32, #tpu.memory_space<vmem>>, vector<8x256xf32>
    tpu.vector_store %arg14[%c24, %c0_55], %91 {strides = array<i32>} : memref<144x256xf32, #tpu.memory_space<vmem>>, vector<8x256xf32>,
    %c32_56 = arith.constant 32 : index
    %c0_57 = arith.constant 0 : index
    %93 = vector.load %arg14[%c32_56, %c0_57] : memref<144x256xf32, #tpu.memory_space<vmem>>, vector<8x256xf32>
    tpu.vector_store %arg14[%c32_56, %c0_57], %72 {strides = array<i32>} : memref<144x256xf32, #tpu.memory_space<vmem>>, vector<8x256xf32>,
    %c255_i32_58 = arith.constant 255 : i32
    %94 = tpu.dynamic_rotate %72 by %c255_i32_58 dim 1 : vector<8x256xf32>, i32 -> vector<8x256xf32>
    %c5_59 = arith.constant 5 : index
    %c0_60 = arith.constant 0 : index
    %95 = vector.load %arg3[%c5_59, %c0_60] : memref<9x256xf32, #tpu.memory_space<vmem>>, vector<1x256xf32>
    %96 = vector.broadcast %95 : vector<1x256xf32> to vector<8x256xf32>
    %97 = arith.mulf %94, %96 : vector<8x256xf32>
    %c40 = arith.constant 40 : index
    %c0_61 = arith.constant 0 : index
    %98 = vector.load %arg14[%c40, %c0_61] : memref<144x256xf32, #tpu.memory_space<vmem>>, vector<8x256xf32>
    tpu.vector_store %arg14[%c40, %c0_61], %97 {strides = array<i32>} : memref<144x256xf32, #tpu.memory_space<vmem>>, vector<8x256xf32>,
    %c241_i32_62 = arith.constant 241 : i32
    %99 = tpu.dynamic_rotate %72 by %c241_i32_62 dim 1 : vector<8x256xf32>, i32 -> vector<8x256xf32>
    %c6_63 = arith.constant 6 : index
    %c0_64 = arith.constant 0 : index
    %100 = vector.load %arg3[%c6_63, %c0_64] : memref<9x256xf32, #tpu.memory_space<vmem>>, vector<1x256xf32>
    %101 = vector.broadcast %100 : vector<1x256xf32> to vector<8x256xf32>
    %102 = arith.mulf %99, %101 : vector<8x256xf32>
    %c48_65 = arith.constant 48 : index
    %c0_66 = arith.constant 0 : index
    %103 = vector.load %arg14[%c48_65, %c0_66] : memref<144x256xf32, #tpu.memory_space<vmem>>, vector<8x256xf32>
    tpu.vector_store %arg14[%c48_65, %c0_66], %102 {strides = array<i32>} : memref<144x256xf32, #tpu.memory_space<vmem>>, vector<8x256xf32>,
    %c240_i32_67 = arith.constant 240 : i32
    %104 = tpu.dynamic_rotate %72 by %c240_i32_67 dim 1 : vector<8x256xf32>, i32 -> vector<8x256xf32>
    %c7_68 = arith.constant 7 : index
    %c0_69 = arith.constant 0 : index
    %105 = vector.load %arg3[%c7_68, %c0_69] : memref<9x256xf32, #tpu.memory_space<vmem>>, vector<1x256xf32>
    %106 = vector.broadcast %105 : vector<1x256xf32> to vector<8x256xf32>
    %107 = arith.mulf %104, %106 : vector<8x256xf32>
    %c56 = arith.constant 56 : index
    %c0_70 = arith.constant 0 : index
    %108 = vector.load %arg14[%c56, %c0_70] : memref<144x256xf32, #tpu.memory_space<vmem>>, vector<8x256xf32>
    tpu.vector_store %arg14[%c56, %c0_70], %107 {strides = array<i32>} : memref<144x256xf32, #tpu.memory_space<vmem>>, vector<8x256xf32>,
    %c239_i32_71 = arith.constant 239 : i32
    %109 = tpu.dynamic_rotate %72 by %c239_i32_71 dim 1 : vector<8x256xf32>, i32 -> vector<8x256xf32>
    %c8_72 = arith.constant 8 : index
    %c0_73 = arith.constant 0 : index
    %110 = vector.load %arg3[%c8_72, %c0_73] : memref<9x256xf32, #tpu.memory_space<vmem>>, vector<1x256xf32>
    %111 = vector.broadcast %110 : vector<1x256xf32> to vector<8x256xf32>
    %112 = arith.mulf %109, %111 : vector<8x256xf32>
    %c64_74 = arith.constant 64 : index
    %c0_75 = arith.constant 0 : index
    %113 = vector.load %arg14[%c64_74, %c0_75] : memref<144x256xf32, #tpu.memory_space<vmem>>, vector<8x256xf32>
    tpu.vector_store %arg14[%c64_74, %c0_75], %112 {strides = array<i32>} : memref<144x256xf32, #tpu.memory_space<vmem>>, vector<8x256xf32>,
    %c0_76 = arith.constant 0 : index
    %c0_77 = arith.constant 0 : index
    %114 = vector.load %arg8[%c0_76, %c0_77] : memref<8x72xf32, #tpu.memory_space<vmem>>, vector<8x72xf32>
    %c0_78 = arith.constant 0 : index
    %c0_79 = arith.constant 0 : index
    %115 = vector.load %arg14[%c0_78, %c0_79] : memref<144x256xf32, #tpu.memory_space<vmem>>, vector<72x256xf32>
    %cst_80 = arith.constant dense<0.000000e+00> : vector<8x256xf32>
    %116 = tpu.matmul %114, %115, %cst_80 {dimension_numbers = #tpu.dot_dimension_numbers<[1], [0], [0], [1], [0, 0, 1, 1], [], []>} : vector<8x72xf32>, vector<72x256xf32>, vector<8x256xf32> -> vector<8x256xf32>
    %c0_81 = arith.constant 0 : index
    %c0_82 = arith.constant 0 : index
    %117 = vector.load %arg11[%c0_81, %c0_82] : memref<8x1xf32, #tpu.memory_space<vmem>>, vector<8x1xf32>
    %118 = vector.broadcast %117 : vector<8x1xf32> to vector<8x256xf32>
    %119 = arith.mulf %116, %118 : vector<8x256xf32>
    %c0_83 = arith.constant 0 : index
    %c0_84 = arith.constant 0 : index
    %120 = vector.load %arg12[%c0_83, %c0_84] : memref<8x1xf32, #tpu.memory_space<vmem>>, vector<8x1xf32>
    %121 = vector.broadcast %120 : vector<8x1xf32> to vector<8x256xf32>
    %122 = arith.addf %119, %121 : vector<8x256xf32>
    %cst_85 = arith.constant 0.000000e+00 : f32
    %123 = vector.broadcast %cst_85 : f32 to vector<8x256xf32>
    %124 = arith.maximumf %122, %123 : vector<8x256xf32>
    %125 = vector.extract_strided_slice %124 {offsets = [0, 0], sizes = [4, 256], strides = [1, 1]} : vector<8x256xf32> to vector<4x256xf32>
    %c0_86 = arith.constant 0 : index
    %c0_87 = arith.constant 0 : index
    %126 = vector.load %arg13[%c0_86, %c0_87] : memref<4x256xf32, #tpu.memory_space<vmem>>, vector<4x256xf32>
    tpu.vector_store %arg13[%c0_86, %c0_87], %125 {strides = array<i32>} : memref<4x256xf32, #tpu.memory_space<vmem>>, vector<4x256xf32>,
    return
  }
  func.func @transform_0(%arg0: i32) -> (i32, i32) {
    %c0_i32 = arith.constant 0 : i32
    %c0_i32_0 = arith.constant 0 : i32
    return %c0_i32, %arg0 : i32, i32
  }
  func.func @transform_1(%arg0: i32) -> (i32, i32) {
    %c0_i32 = arith.constant 0 : i32
    %c0_i32_0 = arith.constant 0 : i32
    return %c0_i32, %arg0 : i32, i32
  }
  func.func @transform_2(%arg0: i32) -> (i32, i32) {
    %c0_i32 = arith.constant 0 : i32
    %c0_i32_0 = arith.constant 0 : i32
    %c0_i32_1 = arith.constant 0 : i32
    return %c0_i32, %c0_i32_0 : i32, i32
  }
  func.func @transform_3(%arg0: i32) -> (i32, i32) {
    %c0_i32 = arith.constant 0 : i32
    %c0_i32_0 = arith.constant 0 : i32
    %c0_i32_1 = arith.constant 0 : i32
    return %c0_i32, %c0_i32_0 : i32, i32
  }
  func.func @transform_4(%arg0: i32) -> (i32, i32) {
    %c0_i32 = arith.constant 0 : i32
    %c0_i32_0 = arith.constant 0 : i32
    %c0_i32_1 = arith.constant 0 : i32
    return %c0_i32, %c0_i32_0 : i32, i32
  }
  func.func @transform_5(%arg0: i32) -> (i32, i32) {
    %c0_i32 = arith.constant 0 : i32
    %c0_i32_0 = arith.constant 0 : i32
    %c0_i32_1 = arith.constant 0 : i32
    return %c0_i32, %c0_i32_0 : i32, i32
  }
  func.func @transform_6(%arg0: i32) -> (i32, i32) {
    %c0_i32 = arith.constant 0 : i32
    %c0_i32_0 = arith.constant 0 : i32
    %c0_i32_1 = arith.constant 0 : i32
    return %c0_i32, %c0_i32_0 : i32, i32
  }
  func.func @transform_7(%arg0: i32) -> (i32, i32) {
    %c0_i32 = arith.constant 0 : i32
    %c0_i32_0 = arith.constant 0 : i32
    %c0_i32_1 = arith.constant 0 : i32
    return %c0_i32, %c0_i32_0 : i32, i32
  }
  func.func @transform_8(%arg0: i32) -> (i32, i32) {
    %c0_i32 = arith.constant 0 : i32
    %c0_i32_0 = arith.constant 0 : i32
    %c0_i32_1 = arith.constant 0 : i32
    return %c0_i32, %c0_i32_0 : i32, i32
  }
  func.func @transform_9(%arg0: i32) -> (i32, i32) {
    %c0_i32 = arith.constant 0 : i32
    %c0_i32_0 = arith.constant 0 : i32
    %c0_i32_1 = arith.constant 0 : i32
    return %c0_i32, %c0_i32_0 : i32, i32
  }
  func.func @transform_10(%arg0: i32) -> (i32, i32) {
    %c0_i32 = arith.constant 0 : i32
    %c0_i32_0 = arith.constant 0 : i32
    %c0_i32_1 = arith.constant 0 : i32
    return %c0_i32, %c0_i32_0 : i32, i32
  }
  func.func @transform_11(%arg0: i32) -> (i32, i32) {
    %c0_i32 = arith.constant 0 : i32
    %c0_i32_0 = arith.constant 0 : i32
    %c0_i32_1 = arith.constant 0 : i32
    return %c0_i32, %c0_i32_0 : i32, i32
  }
  func.func @transform_12(%arg0: i32) -> (i32, i32) {
    %c0_i32 = arith.constant 0 : i32
    %c0_i32_0 = arith.constant 0 : i32
    return %c0_i32, %arg0 : i32, i32
  }
}

</mosaic_0001>

<bundles_post_ra>
// kernel: tpu_custom_call.1
= control target key start
LH: loop header
LB: loop body
LE: loop exit
PB: predicated region body
PF: predicated region fallthrough
CT: control target
= control target key end

     0   :  { %17 = vsyncpa [#allocation4], 0  ;;  %s1896_s0 = inlined_call_operand.vmem [shape: f32[8,512], index: 0, kind: input, shape index: {}]   ;;  %s1897_s1 = inlined_call_operand.vmem [shape: f32[8,512], index: 1, kind: input, shape index: {}]   ;;  %s1898_s2 = inlined_call_operand.vmem [shape: f32[9,256], index: 2, kind: input, shape index: {}]   ;;  %s1899_s3 = inlined_call_operand.vmem [shape: f32[256,1], index: 3, kind: input, shape index: {}]   ;;  %s1900_s4 = inlined_call_operand.vmem [shape: f32[1,256], index: 4, kind: input, shape index: {}]   ;;  %s1901_s5 = inlined_call_operand.vmem [shape: f32[16,16], index: 5, kind: input, shape index: {}]   ;;  %s1902_s6 = inlined_call_operand.vmem [shape: f32[8,144], index: 6, kind: input, shape index: {}]   ;;  %s1903_s7 = inlined_call_operand.vmem [shape: f32[8,72], index: 7, kind: input, shape index: {}]   ;;  %s1904_s8 = inlined_call_operand.vmem [shape: f32[8,1], index: 8, kind: input, shape index: {}]   ;;  %s1905_s9 = inlined_call_operand.vmem [shape: f32[8,1], index: 9, kind: input, shape index: {}]   ;;  %s1906_s10 = inlined_call_operand.vmem [shape: f32[8,1], index: 10, kind: input, shape index: {}]   ;;  %s1907_s11 = inlined_call_operand.vmem [shape: f32[8,1], index: 11, kind: input, shape index: {}]   ;;  %s1908_s12 = inlined_call_operand.hbm [shape: f32[4,512], index: 12, kind: output, shape index: {}]  }
   0x1   :  { %19 = vsyncpa [#allocation4 + $0x1], 0  ;;  %s1452_s19 = smov 0   ;;  %s1454_s20 = smov 0  }
   0x2   :  { %s1456_s21 = smov 0   ;;  %s1458_s22 = smov 0  }
   0x3 LB: > { %s1473_s23 = sadd.s32 4294967295, %s1375_s22   ;;  %s1214_s24 = sadd.s32 4294967294, %s1375_s22   ;;  %s1375_s22 = sphi %s1458_s22, %s1929_s22   ;;  %s1371_s21 = sphi %s1456_s21, %s1928_s21   ;;  %s1367_s20 = sphi %s1454_s20, %s1927_s20   ;;  %s1363_s19 = sphi %s1452_s19, %s1926_s19  }
   0x4   : > { %s1477_s25 = sadd.s32 1, %s1375_s22   ;;  %s294_s26 = sadd.s32 1, %s1371_s21 }
   0x5   : > { %s291_s27 = ssub.s32 %s1375_s22, %s1477_s25  ;;  %p304_p0 = scmp.ne.s32.totalorder %s1371_s21, %s1367_s20 }
   0x6   : > { %p292_p1 = scmp.eq.s32.totalorder %s291_s27, 0  ;;  %p305_p2 = scmp.eq.s32.totalorder %s1473_s23, 1 }
   0x7   : > { %p310_p3 = scmp.ne.s32.totalorder %s1367_s20, %s1363_s19  ;;  %p311_p4 = scmp.eq.s32.totalorder %s1214_s24, 1 }
   0x8   : > { %s1488_s28 = scalar_select %p292_p1, %s1371_s21, %s294_s26  }
   0x9   : > { %p1490_p5 = por %p305_p2, %p304_p0  ;;  %p1494_p6 = por %p311_p4, %p310_p3 }
   0xa   : > { %p1217_p7 = scmp.ge.s32.totalorder %s1375_s22, 1  ;;  %p377_p8 = scmp.lt.s32.totalorder %s1375_s22, 3 }
   0xc   : > { %p378_p9 = pnand %p1217_p7, %p377_p8 }
   0xd   : > { %s1219_s13 = sshll.u32 (!%p378_p9), %s1473_s23, 1  ;;  %s1913_s15 = smov (!%p378_p9), 112  }
   0xe   : > { %381 = sbr.rel (%p378_p9) target bundleno = 1063 (0x427), region = 68  ;;  %p425_p10 = scmp.lt.s32.totalorder (!%p378_p9), %s1219_s13, 3 }
   0xf   : > { %s1381_s3 = smov (!%p378_p9), 127   ;;  %s1915_s4 = smov (!%p378_p9), 15  }
  0x10   : > { %s1917_s17 = smov (!%p378_p9), 16   ;;  %s1909_s24 = smov (!%p378_p9), 17  }
  0x13   : > { %s1931_s13 = smov (!%p425_p10, %s1219_s13), 3  ;;  %v1377_v6 = vmov 256.0   ;;  %v456_v17 = vld [vmem:[%s1901_s5] sm:$0xff]  ;;  %vm458_vm1 = vcmask 130048   ;;  %v457_v18 = vld [vmem:[%s1901_s5 + $0x8] sm:$0xff]  ;;  %v1378_v19 = vmov 0   ;;  %v548_v60 = vlaneseq }
  0x14   : > { %s1220_s14 = sshll.u32 %s1931_s13, 3  ;;  %1303 = vrcp.f32 %v1377_v6  ;;  %1300 = vset.pattern.permute.xlu1 %v1378_v19  ;;  %1302 = vset.pattern.permute.xlu0 %v1378_v19  ;;  %s421_s13 = sand.u32 1, %s1367_s20  }
  0x15   : > { %s434_s16 = scalar_lea.vmem %s1897_s1, %s1220_s14  ;;  %s428_s18 = scalar_lea.vmem %s1896_s0, %s1220_s14  ;;  %1301 = vset.pattern.permute.xlu2 %v1378_v19 }
  0x16   : > { %v1504_v0 = vld [vmem:[%s434_s16] sm:$0xff]  ;;  %v1506_v1 = vld [vmem:[%s434_s16 + $0x8] sm:$0xff]  ;;  %s1379_s14 = smov 113   ;;  %s1911_s16 = smov 1  }
  0x17   : > { %v444_v2 = vadd.f32 %v1506_v1, %v1504_v0  ;;  %v1513_v3 = vld [vmem:[%s428_s18] sm:$0xff]  ;;  %v1515_v4 = vld [vmem:[%s428_s18 + $0x8] sm:$0xff]  ;;  %s1385_s18 = smov 111  }
  0x18   : > { %v441_v5 = vadd.f32 %v1515_v4, %v1513_v3 }
  0x19   : > { %445 = vadd.xlane.f32.xlu0 %v444_v2 }
  0x1a   : > { %v1304_v7 = vpop.eup %1303 }
  0x1b   : > { %v448_v8 = vmul.f32 256.0, %v1304_v7  ;;  %vm452_vm0 = vweird.f32 %v1304_v7 }
  0x1d   : > { %v449_v9 = vsub.f32 1.0, %v448_v8 }
  0x1f   : > { %v450_v10 = vmul.f32 %v1304_v7, %v449_v9 }
  0x21   : > { %442 = vadd.xlane.f32.xlu0 %v441_v5  ;;  %v451_v11 = vadd.f32 %v1304_v7, %v450_v10 }
  0x23   : > { %v453_v12 = vsel %vm452_vm0, %v1304_v7, %v451_v11 }
  0x8c   : > { %v446_v13 = vpop.xlane.xlu0 %445 }
  0x8d   : > { %v455_v14 = vmul.f32 %v453_v12, %v446_v13 }
  0x8f   : > { %479 = vmatpush.msra.mxu0 %v455_v14 }
  0x94   : > { %v443_v15 = vpop.xlane.xlu0 %442 }
  0x95   : > { %v454_v16 = vmul.f32 %v453_v12, %v443_v15 }
  0x97   : > { %480 = vmatpush.msra.mxu0 %v454_v16 }
  0x98   : > { %1223 = vmatmul.msk.f32.vlgmr.msra.gmra.mxu0 %vm458_vm1, %v456_v17 }
  0xa0   : > { %1224 = vmatmul.msk.f32.gmra.mxu0 %vm458_vm1, %v457_v18 }
 0x115   : > { %v482_v20 = vpop.f32.mrf.mxu0 }
 0x116   : > { %v1225_v21 = vmul.f32 -1.442695, %v482_v20 }
 0x118   : > { %1305 = vpow2.f32 %v1225_v21 }
 0x11d   : > { %v485_v22 = vpop.f32.mrf.mxu0 }
 0x11e   : > { %v1306_v23 = vpop.eup %1305  ;;  %v1226_v24 = vmul.f32 -1.442695, %v485_v22 }
 0x11f   : > { %v494_v25 = vadd.f32 1.0, %v1306_v23  ;;  %v1231_v23 = vld [vmem:[%s1898_s2 + $0x6] ss:$8 sm:$0x3] }
 0x120   : > { %1307 = vpow2.f32 %v1226_v24 }
 0x121   : > { %1309 = vrcp.f32 %v494_v25  ;;  %v507_v31 = vand.u32 2147483648, %v494_v25  ;;  %v505_v33 = vand.u32 2147483647, %v494_v25  ;;  %vm501_vm3 = vweird.f32 %v494_v25 }
 0x123   : > { %v508_v36 = vor.u32 1.1754944e-38, %v507_v31  ;;  %vm506_vm5 = vcmp.eq.f32.partialorder %v505_v33, 8.507059e+37 }
 0x126   : > { %v1308_v26 = vpop.eup %1307 }
 0x127   : > { %v1310_v27 = vpop.eup %1309  ;;  %v495_v28 = vadd.f32 1.0, %v1308_v26  ;;  %v701_v26 = vperm.slane %v1231_v23, 0 }
 0x128   : > { %v497_v29 = vmul.f32 %v1310_v27, %v494_v25  ;;  %vm502_vm2 = vweird.f32 %v1310_v27 }
 0x129   : > { %1311 = vrcp.f32 %v495_v28  ;;  %vm503_vm4 = vmor %vm501_vm3, %vm502_vm2  ;;  %v522_v40 = vand.u32 2147483648, %v495_v28  ;;  %vm516_vm6 = vweird.f32 %v495_v28  ;;  %v520_v42 = vand.u32 2147483647, %v495_v28 }
 0x12a   : > { %v498_v30 = vsub.f32 1.0, %v497_v29  ;;  %vm1122_vm3 = vcmask 1043456  }
 0x12b   : > { %v523_v44 = vor.u32 1.1754944e-38, %v522_v40  ;;  %vm521_vm9 = vcmp.eq.f32.partialorder %v520_v42, 8.507059e+37 }
 0x12c   : > { %v499_v32 = vmul.f32 %v1310_v27, %v498_v30 }
 0x12e   : > { %v500_v34 = vadd.f32 %v1310_v27, %v499_v32  ;;  %v1230_v32 = vld [vmem:[%s1898_s2 + $0x5] ss:$8 sm:$0x3] }
 0x12f   : > { %v1312_v35 = vpop.eup %1311  ;;  %v673_v40 = vperm.slane %v1230_v32, 0 }
 0x130   : > { %v504_v37 = vsel %vm503_vm4, %v1310_v27, %v500_v34  ;;  %v512_v38 = vmul.f32 %v1312_v35, %v495_v28  ;;  %vm517_vm7 = vweird.f32 %v1312_v35  ;;  %v702_v27 = vperm.slane %v1231_v23, 1 }
 0x131   : > { %v509_v39 = vsel %vm506_vm5, %v508_v36, %v504_v37  ;;  %vm518_vm8 = vmor %vm516_vm6, %vm517_vm7 }
 0x132   : > { %528 = vperm.xlu1 %1300, %v509_v39   ;;  %v513_v41 = vsub.f32 1.0, %v512_v38 }
 0x134   : > { %v514_v43 = vmul.f32 %v1312_v35, %v513_v41  ;;  %v674_v41 = vperm.slane %v1230_v32, 1 }
 0x136   : > { %v515_v45 = vadd.f32 %v1312_v35, %v514_v43 }
 0x138   : > { %v519_v46 = vsel %vm518_vm8, %v1312_v35, %v515_v45 }
 0x139   : > { %v524_v47 = vsel %vm521_vm9, %v523_v44, %v519_v46 }
 0x13a   : > { %533 = vperm.xlu1 %1300, %v524_v47  }
 0x1a4   : > { %v529_v48 = vpop.permute.xlu1 %528 }
 0x1a5   : > { %v1528_v49 = vmul.f32 %v529_v48, %v1513_v3  ;;  %v1531_v50 = vmul.f32 %v529_v48, %v1515_v4 }
 0x1a7   : > { %685 = vrot.lane.b32.xlu2 %v1528_v49, %s1379_s14  ;;  %713 = vrot.lane.b32.xlu0 %v1528_v49, %s1913_s15 }
 0x1a8   : > { %717 = vrot.lane.b32.xlu1 %v1531_v50, %s1913_s15 }
 0x1ac   : > { %v534_v51 = vpop.permute.xlu1 %533 }
 0x1ad   : > { %v1558_v52 = vmul.f32 %v534_v51, %v1504_v0  ;;  %v1567_v53 = vmul.f32 %v534_v51, %v1506_v1  ;;  %v1609_v0 = vand.u32 127, %v548_v60  ;;  %v1232_v1 = vld [vmem:[%s1898_s2 + $0x7] ss:$8 sm:$0x3] }
 0x1ae   : > { %v729_v6 = vperm.slane %v1232_v1, 0  ;;  %v730_v7 = vperm.slane %v1232_v1, 1 }
 0x1af   : > { %661 = vrot.lane.b32.xlu2 %v1531_v50, %s1381_s3  ;;  %629 = vrot.lane.b32.xlu0 %v1531_v50, %s1911_s16  ;;  %vm721_vm10 = vcmp.lt.s32.totalorder %v1609_v0, 112  ;;  %vm693_vm11 = vcmp.lt.s32.totalorder %v1609_v0, 113  ;;  %vm665_vm12 = vcmp.lt.s32.totalorder %v1609_v0, 127  ;;  %vm633_vm13 = vcmp.lt.s32.totalorder %v1609_v0, 1 }
 0x1b0   : > { %689 = vrot.lane.b32.xlu1 %v1531_v50, %s1379_s14  ;;  %vm605_vm14 = vcmp.lt.s32.totalorder %v1609_v0, 15  ;;  %vm749_vm15 = vcmp.lt.s32.totalorder %v1609_v0, 111  ;;  %vm577_vm0 = vcmp.lt.s32.totalorder %v1609_v0, 16  ;;  %vm550_vm2 = vcmp.lt.s32.totalorder %v1609_v0, 17 }
 0x1b7   : > { %625 = vrot.lane.b32.xlu2 %v1528_v49, %s1911_s16  ;;  %597 = vrot.lane.b32.xlu0 %v1528_v49, %s1915_s4 }
 0x1b8   : > { %657 = vrot.lane.b32.xlu1 %v1528_v49, %s1381_s3 }
 0x1bf   : > { %569 = vrot.lane.b32.xlu2 %v1528_v49, %s1917_s17  ;;  %741 = vrot.lane.b32.xlu0 %v1528_v49, %s1385_s18 }
 0x1c0   : > { %601 = vrot.lane.b32.xlu1 %v1531_v50, %s1915_s4 }
 0x1c7   : > { %573 = vrot.lane.b32.xlu0 %v1531_v50, %s1917_s17  ;;  %715 = vrot.lane.b32.xlu2 %v1558_v52, %s1913_s15 }
 0x1c8   : > { %745 = vrot.lane.b32.xlu1 %v1531_v50, %s1385_s18 }
 0x1cf   : > { %663 = vrot.lane.b32.xlu0 %v1567_v53, %s1381_s3  ;;  %719 = vrot.lane.b32.xlu2 %v1567_v53, %s1913_s15  ;;  %s1921_s15 = smov 16  }
 0x1d0   : > { %691 = vrot.lane.b32.xlu1 %v1567_v53, %s1379_s14 }
 0x1d7   : > { %627 = vrot.lane.b32.xlu0 %v1558_v52, %s1911_s16  ;;  %687 = vrot.lane.b32.xlu2 %v1558_v52, %s1379_s14 }
 0x1d8   : > { %631 = vrot.lane.b32.xlu1 %v1567_v53, %s1911_s16  ;;  %s1922_s16 = smov 15  }
 0x1df   : > { %747 = vrot.lane.b32.xlu0 %v1567_v53, %s1385_s18  ;;  %659 = vrot.lane.b32.xlu2 %v1558_v52, %s1381_s3 }
 0x1e0   : > { %599 = vrot.lane.b32.xlu1 %v1558_v52, %s1915_s4 }
 0x1e7   : > { %540 = vrot.lane.b32.xlu0 %v1528_v49, %s1909_s24  ;;  %603 = vrot.lane.b32.xlu2 %v1567_v53, %s1915_s4  ;;  %s1923_s4 = smov 112  }
 0x1e8   : > { %571 = vrot.lane.b32.xlu1 %v1558_v52, %s1917_s17 }
 0x1ef   : > { %743 = vrot.lane.b32.xlu2 %v1558_v52, %s1385_s18 }
 0x1f0   : > { %542 = vrot.lane.b32.xlu1 %v1558_v52, %s1909_s24 }
 0x1f7   : > { %575 = vrot.lane.b32.xlu2 %v1567_v53, %s1917_s17  ;;  %s1924_s17 = smov 1  }
 0x1f8   : > { %544 = vrot.lane.b32.xlu1 %v1531_v50, %s1909_s24 }
 0x1ff   : > { %546 = vrot.lane.b32.xlu2 %v1567_v53, %s1909_s24 }
 0x201   : > { %v686_v54 = vpop.permute.xlu2 %685 }
 0x209   : > { %v662_v55 = vpop.permute.xlu2 %661 }
 0x211   : > { %v1603_v56 = vpop.permute.xlu2 %625 }
 0x219   : > { %v1605_v57 = vpop.permute.xlu2 %569  ;;  %v714_v58 = vpop.permute.xlu0 %713 }
 0x21a   : > { %v718_v59 = vpop.permute.xlu1 %717 }
 0x21b   : > { %v722_v8 = vsel %vm721_vm10, %v714_v58, %v718_v59  ;;  %v724_v9 = vsel %vm721_vm10, %v718_v59, %v714_v58 }
 0x21c   : > { %v733_v15 = vmul.f32 %v729_v6, %v722_v8  ;;  %v734_v16 = vmul.f32 %v730_v7, %v724_v9 }
 0x221   : > { %v1607_v61 = vpop.permute.xlu0 %629  ;;  %v716_v62 = vpop.permute.xlu2 %715 }
 0x222   : > { %v690_v63 = vpop.permute.xlu1 %689 }
 0x223   : > { %v694_v28 = vsel %vm693_vm11, %v686_v54, %v690_v63  ;;  %v696_v29 = vsel %vm693_vm11, %v690_v63, %v686_v54  ;;  %v1229_v54 = vld [vmem:[%s1898_s2 + $0x3] ss:$8 sm:$0x3]  ;;  %v636_v63 = vsel %vm633_vm13, %v1607_v61, %v1603_v56 }
 0x224   : > { %v705_v38 = vmul.f32 %v701_v26, %v694_v28  ;;  %v706_v39 = vmul.f32 %v702_v27, %v696_v29  ;;  %v641_v59 = vperm.slane %v1229_v54, 0  ;;  %v642_v60 = vperm.slane %v1229_v54, 1 }
 0x226   : > { %v645_v8 = vmul.f32 %v641_v59, %v636_v63  ;;  %v769_v63 = vld [vmem:[%s1902_s6] sm:$0xff] }
 0x229   : > { %v1615_v2 = vpop.permute.xlu0 %597  ;;  %v720_v5 = vpop.permute.xlu2 %719 }
 0x22a   : > { %v658_v10 = vpop.permute.xlu1 %657  ;;  %v723_v11 = vsel %vm721_vm10, %v716_v62, %v720_v5  ;;  %v725_v12 = vsel %vm721_vm10, %v720_v5, %v716_v62  ;;  %v634_v62 = vsel %vm633_vm13, %v1603_v56, %v1607_v61  ;;  %v1228_v5 = vld [vmem:[%s1898_s2 + $0x2] ss:$8 sm:$0x3] }
 0x22b   : > { %v735_v13 = vmul.f32 %v729_v6, %v723_v11  ;;  %v736_v14 = vmul.f32 %v730_v7, %v725_v12  ;;  %v666_v42 = vsel %vm665_vm12, %v658_v10, %v662_v55  ;;  %v668_v43 = vsel %vm665_vm12, %v662_v55, %v658_v10  ;;  %v1233_v6 = vld [vmem:[%s1898_s2 + $0x10] ss:$8 sm:$0x3]  ;;  %v898_v56 = vld [vmem:[%s1905_s9] sm:$0xff] }
 0x22c   : > { %v677_v48 = vmul.f32 %v673_v40, %v666_v42  ;;  %v678_v51 = vmul.f32 %v674_v41, %v668_v43  ;;  %v646_v9 = vmul.f32 %v642_v60, %v634_v62  ;;  %v613_v10 = vperm.slane %v1228_v5, 0  ;;  %901 = vperm.xlu0 %1302, %v898_v56  }
 0x22d   : > { %810 = vmatpush.msra.mxu1 %v735_v13  ;;  %850 = vmatpush.msra.mxu3 %v736_v14  ;;  %v757_v11 = vperm.slane %v1233_v6, 0  ;;  %v614_v14 = vperm.slane %v1228_v5, 1 }
 0x22f   : > { %811 = vmatpush.msra.mxu1 %v733_v15  ;;  %851 = vmatpush.msra.mxu3 %v734_v16 }
 0x231   : > { %v1625_v17 = vpop.permute.xlu0 %741  ;;  %v688_v18 = vpop.permute.xlu2 %687 }
 0x232   : > { %v1627_v19 = vpop.permute.xlu1 %601 }
 0x233   : > { %v606_v12 = vsel %vm605_vm14, %v1615_v2, %v1627_v19  ;;  %v608_v15 = vsel %vm605_vm14, %v1627_v19, %v1615_v2 }
 0x234   : > { %v617_v19 = vmul.f32 %v613_v10, %v608_v15  ;;  %v618_v28 = vmul.f32 %v614_v14, %v606_v12 }
 0x239   : > { %v1629_v20 = vpop.permute.xlu0 %573  ;;  %v660_v21 = vpop.permute.xlu2 %659 }
 0x23a   : > { %v1631_v22 = vpop.permute.xlu1 %745 }
 0x23b   : > { %v752_v2 = vsel %vm749_vm15, %v1631_v22, %v1625_v17 }
 0x241   : > { %v664_v24 = vpop.permute.xlu0 %663  ;;  %v1649_v33 = vpop.permute.xlu2 %603 }
 0x242   : > { %v692_v25 = vpop.permute.xlu1 %691  ;;  %v667_v36 = vsel %vm665_vm12, %v660_v21, %v664_v24  ;;  %v669_v37 = vsel %vm665_vm12, %v664_v24, %v660_v21 }
 0x243   : > { %v695_v30 = vsel %vm693_vm11, %v688_v18, %v692_v25  ;;  %v697_v31 = vsel %vm693_vm11, %v692_v25, %v688_v18  ;;  %v679_v44 = vmul.f32 %v673_v40, %v667_v36  ;;  %v680_v45 = vmul.f32 %v674_v41, %v669_v37  ;;  %v555_v41 = vld [vmem:[%s1898_s2] ss:$8 sm:$0x3] }
 0x244   : > { %v707_v34 = vmul.f32 %v701_v26, %v695_v30  ;;  %v708_v35 = vmul.f32 %v702_v27, %v697_v31  ;;  %v758_v27 = vperm.slane %v1233_v6, 1  ;;  %v1227_v30 = vld [vmem:[%s1898_s2 + $0x1] ss:$8 sm:$0x3]  ;;  %v580_v36 = vsel %vm577_vm0, %v1629_v20, %v1605_v57 }
 0x245   : > { %v770_v31 = vld [vmem:[%s1902_s6 + $0x8] sm:$0xff] }
 0x246   : > { %812 = vmatpush.msra.mxu1 %v707_v34  ;;  %852 = vmatpush.msra.mxu3 %v708_v35  ;;  %v586_v34 = vperm.slane %v1227_v30, 1  ;;  %v578_v35 = vsel %vm577_vm0, %v1605_v57, %v1629_v20  ;;  %v557_v57 = vperm.slane %v555_v41, 0  ;;  %v558_v20 = vperm.slane %v555_v41, 1 }
 0x248   : > { %813 = vmatpush.msra.mxu1 %v705_v38  ;;  %853 = vmatpush.msra.mxu3 %v706_v39  ;;  %v590_v43 = vmul.f32 %v586_v34, %v578_v35 }
 0x249   : > { %v628_v46 = vpop.permute.xlu0 %627  ;;  %v744_v1 = vpop.permute.xlu2 %743 }
 0x24a   : > { %814 = vmatpush.msra.mxu1 %v679_v44  ;;  %854 = vmatpush.msra.mxu3 %v680_v45  ;;  %v632_v47 = vpop.permute.xlu1 %631 }
 0x24b   : > { %v635_v55 = vsel %vm633_vm13, %v628_v46, %v632_v47  ;;  %v637_v58 = vsel %vm633_vm13, %v632_v47, %v628_v46 }
 0x24c   : > { %815 = vmatpush.msra.mxu1 %v677_v48  ;;  %855 = vmatpush.msra.mxu3 %v678_v51  ;;  %v648_v61 = vmul.f32 %v642_v60, %v635_v55 }
 0x24e   : > { %816 = vmatpush.msra.mxu1 %v1558_v52  ;;  %856 = vmatpush.msra.mxu3 %v1567_v53  ;;  %v890_v52 = vld [vmem:[%s1904_s8] sm:$0xff]  ;;  %v647_v53 = vmul.f32 %v641_v59, %v637_v58 }
 0x24f   : > { %893 = vperm.xlu2 %1301, %v890_v52  }
 0x250   : > { %817 = vmatpush.msra.mxu1 %v1528_v49  ;;  %857 = vmatpush.msra.mxu3 %v1531_v50  ;;  %v750_v49 = vsel %vm749_vm15, %v1625_v17, %v1631_v22  ;;  %v762_v17 = vmul.f32 %v758_v27, %v752_v2 }
 0x251   : > { %v748_v7 = vpop.permute.xlu0 %747  ;;  %v761_v26 = vmul.f32 %v757_v11, %v750_v49  ;;  %v576_v32 = vpop.permute.xlu2 %575 }
 0x252   : > { %818 = vmatpush.msra.mxu1 %v647_v53  ;;  %858 = vmatpush.msra.mxu3 %v648_v61  ;;  %v600_v50 = vpop.permute.xlu1 %599  ;;  %v751_v13 = vsel %vm749_vm15, %v744_v1, %v748_v7  ;;  %v753_v23 = vsel %vm749_vm15, %v748_v7, %v744_v1 }
 0x253   : > { %v607_v16 = vsel %vm605_vm14, %v600_v50, %v1649_v33  ;;  %v609_v18 = vsel %vm605_vm14, %v1649_v33, %v600_v50  ;;  %v763_v21 = vmul.f32 %v757_v11, %v751_v13  ;;  %v764_v29 = vmul.f32 %v758_v27, %v753_v23  ;;  %v1101_v50 = vld [vmem:[%s1906_s10] sm:$0xff] }
 0x254   : > { %819 = vmatpush.msra.mxu1 %v645_v8  ;;  %859 = vmatpush.msra.mxu3 %v646_v9  ;;  %v619_v24 = vmul.f32 %v613_v10, %v609_v18  ;;  %v620_v25 = vmul.f32 %v614_v14, %v607_v16  ;;  %v585_v33 = vperm.slane %v1227_v30, 0  ;;  %v1109_v13 = vld [vmem:[%s1907_s11] sm:$0xff]  ;;  %v1242_v16 = vld [vmem:[%s1898_s2 + $0x10] ss:$8 sm:$0x3] }
 0x255   : > { %844 = vmatpush.msra.mxu2 %v763_v21  ;;  %v1031_v21 = vperm.slane %v1242_v16, 1  ;;  %v1030_v23 = vperm.slane %v1242_v16, 0 }
 0x256   : > { %820 = vmatpush.msra.mxu1 %v619_v24  ;;  %860 = vmatpush.msra.mxu3 %v620_v25  ;;  %v589_v42 = vmul.f32 %v585_v33, %v580_v36 }
 0x257   : > { %845 = vmatpush.msra.mxu2 %v761_v26 }
 0x258   : > { %821 = vmatpush.msra.mxu1 %v617_v19  ;;  %861 = vmatpush.msra.mxu3 %v618_v28  ;;  %v1241_v28 = vld [vmem:[%s1898_s2 + $0x7] ss:$8 sm:$0x3] }
 0x259   : > { %884 = vmatpush.msrb.mxu2 %v764_v29  ;;  %v547_v44 = vpop.permute.xlu2 %546  ;;  %v541_v54 = vpop.permute.xlu0 %540  ;;  %v1015_v29 = vperm.slane %v1241_v28, 1  ;;  %v1014_v30 = vperm.slane %v1241_v28, 0 }
 0x25a   : > { %v572_v22 = vpop.permute.xlu1 %571  ;;  %1234 = vmatmul.msk.f32.vlgmr.msra.gmra.mxu2 %vm458_vm1, %v770_v31 }
 0x25b   : > { %v579_v37 = vsel %vm577_vm0, %v572_v22, %v576_v32  ;;  %v581_v38 = vsel %vm577_vm0, %v576_v32, %v572_v22  ;;  %885 = vmatpush.msrb.mxu2 %v762_v17 }
 0x25c   : > { %v591_v39 = vmul.f32 %v585_v33, %v581_v38  ;;  %v592_v40 = vmul.f32 %v586_v34, %v579_v37  ;;  %v1240_v37 = vld [vmem:[%s1898_s2 + $0x6] ss:$8 sm:$0x3] }
 0x25d   : > { %v998_v41 = vperm.slane %v1240_v37, 0 }
 0x25e   : > { %822 = vmatpush.msra.mxu1 %v591_v39  ;;  %862 = vmatpush.msra.mxu3 %v592_v40  ;;  %v1239_v39 = vld [vmem:[%s1898_s2 + $0x5] ss:$8 sm:$0x3]  ;;  %v999_v40 = vperm.slane %v1240_v37, 1 }
 0x260   : > { %823 = vmatpush.msra.mxu1 %v589_v42  ;;  %863 = vmatpush.msra.mxu3 %v590_v43  ;;  %v983_v42 = vperm.slane %v1239_v39, 1 }
 0x262   : > { %v543_v45 = vpop.permute.xlu1 %542  ;;  %1235 = vmatmul.msk.f32.vlgmr.msrb.gmra.mxu2 %vm458_vm1, %v770_v31  ;;  %vm1057_vm1 = vcmask 588800  }
 0x263   : > { %v552_v46 = vsel %vm550_vm2, %v543_v45, %v547_v44  ;;  %v554_v47 = vsel %vm550_vm2, %v547_v44, %v543_v45 }
 0x264   : > { %v563_v48 = vmul.f32 %v557_v57, %v554_v47  ;;  %v564_v51 = vmul.f32 %v558_v20, %v552_v46 }
 0x266   : > { %824 = vmatpush.msra.mxu1 %v563_v48  ;;  %864 = vmatpush.msra.mxu3 %v564_v51 }
 0x26a   : > { %v545_v55 = vpop.permute.xlu1 %544 }
 0x26b   : > { %v551_v58 = vsel %vm550_vm2, %v541_v54, %v545_v55  ;;  %v553_v59 = vsel %vm550_vm2, %v545_v55, %v541_v54  ;;  %v1237_v54 = vld [vmem:[%s1898_s2 + $0x2] ss:$8 sm:$0x3] }
 0x26c   : > { %v561_v60 = vmul.f32 %v557_v57, %v553_v59  ;;  %v562_v62 = vmul.f32 %v558_v20, %v551_v58  ;;  %v982_v57 = vperm.slane %v1239_v39, 0  ;;  %v1238_v20 = vld [vmem:[%s1898_s2 + $0x3] ss:$8 sm:$0x3] }
 0x26d   : > { %v965_v58 = vperm.slane %v1238_v20, 1 }
 0x26e   : > { %825 = vmatpush.msra.mxu1 %v561_v60  ;;  %865 = vmatpush.msra.mxu3 %v562_v62  ;;  %v964_v62 = vperm.slane %v1238_v20, 0 }
 0x26f   : > { %826 = vmatmul.f32.vlgmr.msra.gmra.mxu1 %v769_v63  ;;  %866 = vmatmul.f32.vlgmr.msra.gmra.mxu3 %v769_v63 }
 0x29e   : > { %v902_v53 = vpop.permute.xlu0 %901 }
 0x2a9   : > { %v894_v56 = vpop.permute.xlu2 %893 }
 0x2dd   : > { %v847_v5 = vpop.f32.mrf.mxu2 }
 0x2e5   : > { %v887_v11 = vpop.f32.mrf.mxu2 }
 0x2ec   : > { %v827_v1 = vpop.f32.mrf.mxu1 }
 0x2ed   : > { %v828_v6 = vadd.f32 %v827_v1, %v1513_v3 }
 0x2ef   : > { %v848_v52 = vadd.f32 %v847_v5, %v828_v6  ;;  %v1236_v5 = vld [vmem:[%s1898_s2 + $0x1] ss:$8 sm:$0x3] }
 0x2f1   : > { %v896_v61 = vmul.f32 %v894_v56, %v848_v52  ;;  %v948_v52 = vperm.slane %v1237_v54, 0 }
 0x2f2   : > { %v867_v7 = vpop.f32.mrf.mxu3 }
 0x2f3   : > { %v904_v8 = vadd.f32 %v902_v53, %v896_v61  ;;  %v868_v10 = vadd.f32 %v867_v7, %v1515_v4  ;;  %v933_v61 = vperm.slane %v1236_v5, 1 }
 0x2f5   : > { %v1756_v9 = vmax.f32 %v904_v8, 0.0  ;;  %v888_v3 = vadd.f32 %v887_v11, %v868_v10  ;;  %v932_v10 = vperm.slane %v1236_v5, 0 }
 0x2f7   : > { %974 = vrot.lane.b32.xlu2 %v1756_v9, %s1381_s3  ;;  %990 = vrot.lane.b32.xlu0 %v1756_v9, %s1379_s14  ;;  %v897_v12 = vmul.f32 %v894_v56, %v888_v3  ;;  %v949_v56 = vperm.slane %v1237_v54, 1 }
 0x2f8   : > { %1022 = vrot.lane.b32.xlu1 %v1756_v9, %s1385_s18 }
 0x2f9   : > { %v905_v4 = vadd.f32 %v902_v53, %v897_v12 }
 0x2fb   : > { %v1771_v49 = vmax.f32 %v905_v4, 0.0 }
 0x2ff   : > { %924 = vrot.lane.b32.xlu2 %v1756_v9, %s1921_s15  ;;  %940 = vrot.lane.b32.xlu0 %v1756_v9, %s1922_s16 }
 0x300   : > { %1006 = vrot.lane.b32.xlu1 %v1756_v9, %s1923_s4 }
 0x307   : > { %976 = vrot.lane.b32.xlu0 %v1771_v49, %s1381_s3  ;;  %1024 = vrot.lane.b32.xlu2 %v1771_v49, %s1385_s18  ;;  %s1925_s3 = smov 17   ;;  %s1250_s18 = sshll.u32 %s1473_s23, 3 }
 0x308   : > { %956 = vrot.lane.b32.xlu1 %v1756_v9, %s1924_s17  ;;  %s1138_s27 = scalar_lea.hbm %s1908_s12, %s1250_s18  ;;  %s1127_s23 = scalar_lea.sflag [#allocation4], %s421_s13 }
 0x30f   : > { %926 = vrot.lane.b32.xlu0 %v1771_v49, %s1921_s15  ;;  %1008 = vrot.lane.b32.xlu2 %v1771_v49, %s1923_s4  ;;  %s1142_s4 = sshll.u32 %s1138_s27, 4  ;;  %s1143_s4 = int_to_ptr.hbm [resolvable:$true] %s1142_s4 }
 0x310   : > { %992 = vrot.lane.b32.xlu1 %v1771_v49, %s1379_s14 }
 0x317   : > { %1104 = vperm.xlu0 %1302, %v1101_v50   ;;  %958 = vrot.lane.b32.xlu2 %v1771_v49, %s1924_s17  ;;  %s1327_s17 = sshra.s32 %s1143_s4, 4  ;;  %s1328_s17 = int_to_ptr.hbm [resolvable:$true] %s1327_s17 }
 0x318   : > { %942 = vrot.lane.b32.xlu1 %v1771_v49, %s1922_s16  ;;  %s1329_s24 = scalar_lea.hbm %s1328_s17, 8  ;;  %p1334_p0 = scmp.lt.s32.totalorder %s1328_s17, %s1908_s12 }
 0x319   : > { %p1330_p11 = scmp.ne.s32.totalorder %s1328_s17, %s1329_s24 }
 0x31b   : > { %p1331_p12 = pnand %p1330_p11, %p1490_p5 }
 0x31d   : > { %p1332_p13 = pneg %p1331_p12 }
 0x31f   : > { %910 = vrot.lane.b32.xlu2 %v1771_v49, %s1925_s3 }
 0x320   : > { %908 = vrot.lane.b32.xlu1 %v1756_v9, %s1925_s3  ;;  %s1218_s3 = sshll.u32 %s421_s13, 3 }
 0x321   : > { %s423_s15 = scalar_lea.vmem [#allocation3], %s1218_s3  ;;  %s1333_s3 = scalar_lea.hbm %s1908_s12, 16 }
 0x322   : > { %s1140_s16 = sshll.u32 %s423_s15, 4  ;;  %p1335_p1 = scmp.lt.s32.totalorder %s1333_s3, %s1329_s24  ;;  %s1141_s16 = int_to_ptr.vmem [resolvable:$true] %s1140_s16 }
 0x324   : > { %p1336_p2 = por %p1335_p1, %p1334_p0 }
 0x326   : > { %p1337_p3 = pnand %p1336_p2, %p1332_p13 }
 0x328   : > { %1112 = vperm.xlu1 %1300, %v1109_v13  }
 0x351   : > { %v975_v14 = vpop.permute.xlu2 %974 }
 0x359   : > { %v1799_v15 = vpop.permute.xlu2 %924 }
 0x361   : > { %v1025_v18 = vpop.permute.xlu2 %1024 }
 0x369   : > { %v991_v24 = vpop.permute.xlu0 %990  ;;  %v1009_v31 = vpop.permute.xlu2 %1008 }
 0x36a   : > { %v1023_v25 = vpop.permute.xlu1 %1022 }
 0x36b   : > { %v1026_v26 = vsel %vm749_vm15, %v1023_v25, %v1025_v18  ;;  %v1027_v27 = vsel %vm749_vm15, %v1025_v18, %v1023_v25 }
 0x36c   : > { %v1035_v2 = vmul.f32 %v1031_v21, %v1027_v27  ;;  %v1034_v19 = vmul.f32 %v1030_v23, %v1026_v26  ;;  %v1038_v27 = vld [vmem:[%s1903_s7] sm:$0xff] }
 0x36e   : > { %1068 = vmatpush.msrb.mxu0 %v1034_v19  ;;  %1088 = vmatpush.msra.mxu2 %v1035_v2 }
 0x371   : > { %v941_v33 = vpop.permute.xlu0 %940  ;;  %v959_v55 = vpop.permute.xlu2 %958 }
 0x372   : > { %v1007_v32 = vpop.permute.xlu1 %1006 }
 0x373   : > { %v1010_v17 = vsel %vm721_vm10, %v1007_v32, %v1009_v31  ;;  %v1011_v22 = vsel %vm721_vm10, %v1009_v31, %v1007_v32 }
 0x374   : > { %v1019_v34 = vmul.f32 %v1015_v29, %v1011_v22  ;;  %v1018_v35 = vmul.f32 %v1014_v30, %v1010_v17 }
 0x376   : > { %1069 = vmatpush.msrb.mxu0 %v1018_v35  ;;  %1089 = vmatpush.msra.mxu2 %v1019_v34 }
 0x379   : > { %v977_v38 = vpop.permute.xlu0 %976  ;;  %v911_v18 = vpop.permute.xlu2 %910 }
 0x37a   : > { %v957_v36 = vpop.permute.xlu1 %956  ;;  %v978_v44 = vsel %vm665_vm12, %v975_v14, %v977_v38  ;;  %v979_v45 = vsel %vm665_vm12, %v977_v38, %v975_v14 }
 0x37b   : > { %v987_v59 = vmul.f32 %v983_v42, %v979_v45  ;;  %v986_v60 = vmul.f32 %v982_v57, %v978_v44  ;;  %v960_v63 = vsel %vm633_vm13, %v957_v36, %v959_v55  ;;  %v961_v1 = vsel %vm633_vm13, %v959_v55, %v957_v36 }
 0x37c   : > { %v969_v53 = vmul.f32 %v965_v58, %v960_v63  ;;  %v968_v8 = vmul.f32 %v964_v62, %v961_v1 }
 0x381   : > { %v927_v6 = vpop.permute.xlu0 %926 }
 0x382   : > { %v993_v43 = vpop.permute.xlu1 %992  ;;  %v928_v11 = vsel %vm577_vm0, %v1799_v15, %v927_v6  ;;  %v929_v3 = vsel %vm577_vm0, %v927_v6, %v1799_v15 }
 0x383   : > { %v994_v46 = vsel %vm693_vm11, %v991_v24, %v993_v43  ;;  %v995_v47 = vsel %vm693_vm11, %v993_v43, %v991_v24  ;;  %v937_v13 = vmul.f32 %v933_v61, %v928_v11  ;;  %v936_v14 = vmul.f32 %v932_v10, %v929_v3 }
 0x384   : > { %v1003_v48 = vmul.f32 %v999_v40, %v995_v47  ;;  %v1002_v51 = vmul.f32 %v998_v41, %v994_v46 }
 0x386   : > { %1070 = vmatpush.msrb.mxu0 %v1002_v51  ;;  %1090 = vmatpush.msra.mxu2 %v1003_v48 }
 0x388   : > { %1071 = vmatpush.msrb.mxu0 %v986_v60  ;;  %1091 = vmatpush.msra.mxu2 %v987_v59 }
 0x389   : > { %v1105_v19 = vpop.permute.xlu0 %1104 }
 0x38a   : > { %v943_v7 = vpop.permute.xlu1 %942  ;;  %1072 = vmatpush.msrb.mxu0 %v1756_v9  ;;  %1092 = vmatpush.msra.mxu2 %v1771_v49  ;;  %v914_v49 = vld [vmem:[%s1898_s2] ss:$8 sm:$0x3] }
 0x38b   : > { %v944_v12 = vsel %vm605_vm14, %v941_v33, %v943_v7  ;;  %v945_v4 = vsel %vm605_vm14, %v943_v7, %v941_v33  ;;  %v917_v15 = vperm.slane %v914_v49, 1  ;;  %v916_v16 = vperm.slane %v914_v49, 0 }
 0x38c   : > { %v953_v50 = vmul.f32 %v949_v56, %v944_v12  ;;  %1073 = vmatpush.msrb.mxu0 %v968_v8  ;;  %1093 = vmatpush.msra.mxu2 %v969_v53  ;;  %v952_v9 = vmul.f32 %v948_v52, %v945_v4 }
 0x38e   : > { %1074 = vmatpush.msrb.mxu0 %v952_v9  ;;  %1094 = vmatpush.msra.mxu2 %v953_v50 }
 0x390   : > { %1075 = vmatpush.msrb.mxu0 %v936_v14  ;;  %1095 = vmatpush.msra.mxu2 %v937_v13 }
 0x392   : > { %v909_v21 = vpop.permute.xlu1 %908 }
 0x393   : > { %v912_v23 = vsel %vm550_vm2, %v909_v21, %v911_v18  ;;  %v913_v24 = vsel %vm550_vm2, %v911_v18, %v909_v21 }
 0x394   : > { %v921_v25 = vmul.f32 %v917_v15, %v912_v23  ;;  %v920_v26 = vmul.f32 %v916_v16, %v913_v24 }
 0x396   : > { %1076 = vmatpush.msrb.mxu0 %v920_v26  ;;  %1096 = vmatpush.msra.mxu2 %v921_v25 }
 0x397   : > { %1243 = vmatmul.msk.f32.vlgmr.msrb.gmra.mxu0 %vm1057_vm1, %v1038_v27  ;;  %1244 = vmatmul.msk.f32.vlgmr.msra.gmra.mxu2 %vm1057_vm1, %v1038_v27 }
 0x39a   : > { %v1113_v30 = vpop.permute.xlu1 %1112 }
 0x414   : > { %v1078_v2 = vpop.f32.mrf.mxu0 }
 0x415   : > { %v1107_v28 = vmul.f32 %v1105_v19, %v1078_v2 }
 0x417   : > { %v1115_v31 = vadd.f32 %v1113_v30, %v1107_v28 }
 0x419   : > { %v1117_v22 = vmax.f32 %v1115_v31, 0.0 }
 0x41a   : > { %v1098_v29 = vpop.f32.mrf.mxu2 }
 0x41b   : > { %v1108_v0 = vmul.f32 %v1105_v19, %v1098_v29 }
 0x41d   : > { %v1116_v32 = vadd.f32 %v1113_v30, %v1108_v0 }
 0x41f   : > { %v1118_v17 = vmax.f32 %v1116_v32, 0.0 }
 0x421   : > { %v1121_v33 = vrot.slane %v1118_v17, 4 }
 0x423   : > { %v1123_v34 = vsel %vm1122_vm3, %v1117_v22, %v1121_v33 }
 0x424   : > { %1125 = vst [vmem:[%s423_s15] sm:$0xff] %v1123_v34 }
 0x425   : > { %1340 = shalt.err (!%p1337_p3)
}
 0x426   : > { %1251 = dma.vmem_to_hbm [thread:$0]  (%p1490_p5), %s1141_s16, 128, %s1143_s4, %s1127_s23  }
 0x427 PF: > { %p1257_p4 = scmp.ge.s32.totalorder %s1375_s22, 2  ;;  %s1154_s13 = sand.u32 1, %s1363_s19  }
 0x428   : > { %s1155_s15 = scalar_lea.sflag [#allocation4], %s1154_s13 }
 0x429   : > { %p1254_p7 = pnand %p1257_p4, %p1494_p6 }
 0x42b   : > { %p1255_p8 = pneg %p1254_p7 }
 0x42d   : > { %1358 = dma.done.wait (%p1255_p8), %s1155_s15, 128  }
 0x42e   : > { %1360 = vsyncadd (%p1255_p8), %s1155_s15, 4294967168  ;;  %p22_p9 = scmp.ge.s32.totalorder %s1477_s25, 4   ;;  %s1926_s19 = smov %s1367_s20 }
 0x42f   : > { %s1927_s20 = smov %s1371_s21  ;;  %s1928_s21 = smov %s1488_s28 }
 0x430   : > { %s1929_s22 = smov %s1477_s25  ;;  %24 = sbr.rel (!%p22_p9) target bundleno = 3 (0x3), region = 113 }
 0x435   :  { %1161 = vsyncpa [#allocation4], 1 }
 0x436   :  { %1163 = vsyncpa [#allocation4 + $0x1], 1 }

</bundles_post_ra>
